<compile_context>
chip_gen: v6e
topology: v6e:2x2x1
jax: 0.10.0
libtpu: 0.0.40
codegen_flags: <defaults>
</compile_context>

<pallas_src>
import jax
import jax.numpy as jnp
from jax.experimental import pallas as pl
from jax.experimental.pallas import tpu as pltpu


# ----------------------------------------------------------------------------
# Shared math: both HeteroGraphConv layers + inter-layer ReLU.
# Used by the Pallas kernel (accessors read VMEM refs) and by the pure-JAX
# matched reference (accessors index plain arrays), so check 1 validates the
# Pallas plumbing exactly.
# ----------------------------------------------------------------------------
def _hgcn_body(x_of, adj_of, nd_of, w1_of, w2_of, b1_of, b2_of, st):
    T = st["num_types"]
    n_pad, hid_pad, out_pad = st["n_pad"], st["hid_pad"], st["out_pad"]

    def hetero_layer(src_of, w_of, b_of, src_rels, fout_pad):
        """One HeteroGraphConv layer with aggregate='sum'."""
        acc = [None] * T
        for s in range(T):
            rl = src_rels[s]
            if not rl:
                continue
            xs = src_of(s)                     # bf16 [n_pad, fin_pad]
            if xs is None:
                continue
            # One wide transform matmul per source type (bf16 MXU, f32 acc).
            t = jnp.dot(xs, w_of(s), preferred_element_type=jnp.float32)
            tb = t.astype(jnp.bfloat16)        # single bf16 re-cast per source type
            for slot, r, d in rl:
                ts = tb[:, slot * fout_pad:(slot + 1) * fout_pad]
                # adjacency carries the src norm (bf16); dst norm applied in f32
                c = nd_of(r) * jnp.dot(adj_of(r), ts,
                                       preferred_element_type=jnp.float32)
                acc[d] = c if acc[d] is None else acc[d] + c
        # per-dst-type pre-summed, row-masked bias: one add per dst type
        return [None if a is None else a + b_of(d) for d, a in enumerate(acc)]

    # ---- layer 1 + F.relu (f32 VPU) + one bf16 cast per type for layer 2 ----
    h = hetero_layer(x_of, w1_of, b1_of, st["src_rels1"], hid_pad)
    h = [None if v is None else jnp.maximum(v, 0.0).astype(jnp.bfloat16)
         for v in h]

    # ---- layer 2 -------------------------------------------------------------
    out = hetero_layer(lambda s: h[s], w2_of, b2_of, st["src_rels2"], out_pad)
    return [jnp.zeros((n_pad, out_pad), jnp.float32) if v is None else v
            for v in out]


# ----------------------------------------------------------------------------
# Fused Pallas kernel (single block: everything fits VMEM at these sizes)
# ----------------------------------------------------------------------------
def _make_kernel(static):
    def kernel(x_ref, adj_ref, nd_ref, w1_ref, w2_ref, b1_ref, b2_ref, out_ref):
        outs = _hgcn_body(lambda s: x_ref[s],
                          lambda r: adj_ref[r],
                          lambda r: nd_ref[r],
                          lambda s: w1_ref[s],
                          lambda s: w2_ref[s],
                          lambda d: b1_ref[d],
                          lambda d: b2_ref[d],
                          static)
        for d, v in enumerate(outs):
            out_ref[d] = v.astype(out_ref.dtype)
    return kernel


def _full_spec(shape):
    zeros = (0,) * len(shape)
    return pl.BlockSpec(shape, lambda i: zeros)


def hgcn_fused_forward(arrs, static):
    """Single pallas_call for the whole 2-layer HGCN forward pass."""
    x, adj, ndv, w1, w2, b1, b2 = arrs
    T = static["num_types"]
    n_pad, hid_pad, out_pad = static["n_pad"], static["hid_pad"], static["out_pad"]

    # Advisory cost estimate (padded flops, input + output bytes).
    flops = 0
    for src_rels, fin_pad, fout_pad, wcat in (
            (static["src_rels1"], x.shape[2], hid_pad, w1),
            (static["src_rels2"], hid_pad, out_pad, w2)):
        for s in range(T):
            rl = src_rels[s]
            if not rl:
                continue
            flops += 2 * n_pad * fin_pad * wcat.shape[2]        # concat transform
            flops += 2 * len(rl) * n_pad * n_pad * fout_pad     # aggregation
    bytes_accessed = int(sum(a.size * a.dtype.itemsize for a in arrs)
                         + T * n_pad * out_pad * 4)

    return pl.pallas_call(
        _make_kernel(static),
        grid=(1,),
        out_shape=jax.ShapeDtypeStruct((T, n_pad, out_pad), jnp.float32),
        in_specs=[_full_spec(a.shape) for a in arrs],
        out_specs=pl.BlockSpec((T, n_pad, out_pad), lambda i: (0, 0, 0)),
        compiler_params=pltpu.CompilerParams(
            dimension_semantics=("arbitrary",),
            vmem_limit_bytes=32 * 1024 * 1024),
        cost_estimate=pl.CostEstimate(flops=int(flops), transcendentals=0,
                                      bytes_accessed=bytes_accessed),
    )(*arrs)


# ----------------------------------------------------------------------------
# Packing / graph preprocessing (runs once, outside the kernel)
# ----------------------------------------------------------------------------
def _round_up(x, m):
    return -(-x // m) * m


def degree_norms(adjT):
    """D_src^{-1/2} (src out-degree) and D_dst^{-1/2} (dst in-degree),
    degrees clamped to min 1, exactly like DGL GraphConv(norm='both')."""
    deg_src = jnp.maximum(jnp.sum(adjT, axis=0), 1.0)     # [N_src]
    deg_dst = jnp.maximum(jnp.sum(adjT, axis=1), 1.0)     # [N_dst]
    return jax.lax.rsqrt(deg_src)[:, None], jax.lax.rsqrt(deg_dst)[:, None]


def pack_hgcn(graph, feats, params1, params2, ntypes, rels, num_nodes,
              n_pad, in_pad, hid_pad, out_pad):
    """Pack the heterograph into stacked, padded, lane-dense arrays plus a
    static (Python) routing structure baked into the kernel."""
    T, R = len(ntypes), len(rels)
    tidx = {t: i for i, t in enumerate(ntypes)}

    # --- features: zero-padded, cast to bf16 once on the host ----------------
    x = jnp.zeros((T, n_pad, in_pad), jnp.float32)
    for t, f in feats.items():
        x = x.at[tidx[t], :f.shape[0], :f.shape[1]].set(f)
    x = x.astype(jnp.bfloat16)

    # --- adjacency: A^T with the src norm folded (bf16); dst norm kept f32 ---
    adj = jnp.zeros((R, n_pad, n_pad), jnp.float32)
    ndv = jnp.zeros((R, n_pad, 1), jnp.float32)
    rel_sd = []
    for r, rel in enumerate(rels):
        st, dt, adjT = graph[rel]                      # A^T : [N_dst, N_src]
        ns, nd = degree_norms(adjT)
        adj = adj.at[r, :adjT.shape[0], :adjT.shape[1]].set(adjT * ns.T)
        ndv = ndv.at[r, :nd.shape[0], :].set(nd)
        rel_sd.append((tidx[st], tidx[dt]))
    adj = adj.astype(jnp.bfloat16)

    # --- static relation routing (which sources feed which layer) ------------
    feat_src = {tidx[t] for t in feats}
    act1 = [r for r, (s, _d) in enumerate(rel_sd) if s in feat_src]
    dst1 = {rel_sd[r][1] for r in act1}
    act2 = [r for r, (s, _d) in enumerate(rel_sd) if s in dst1]

    def group_by_src(active):
        g = [[] for _ in range(T)]
        for r in active:
            s, d = rel_sd[r]
            g[s].append((len(g[s]), r, d))
        return tuple(tuple(v) for v in g)

    src_rels1, src_rels2 = group_by_src(act1), group_by_src(act2)
    rmax1 = max((len(v) for v in src_rels1), default=0) or 1
    rmax2 = max((len(v) for v in src_rels2), default=0) or 1

    # --- per-source-type concatenated weights (bf16, zero-padded) ------------
    def pack_w(params, src_rels, rmax, fin_pad, fout_pad):
        w = jnp.zeros((T, fin_pad, rmax * fout_pad), jnp.float32)
        for s in range(T):
            for slot, r, _d in src_rels[s]:
                wl = params[rels[r]][0]
                w = w.at[s, :wl.shape[0],
                         slot * fout_pad: slot * fout_pad + wl.shape[1]].set(wl)
        return w.astype(jnp.bfloat16)

    w1 = pack_w(params1, src_rels1, rmax1, in_pad, hid_pad)
    w2 = pack_w(params2, src_rels2, rmax2, hid_pad, out_pad)

    # --- per-dst-type summed bias, pre-broadcast & row-masked (f32) ----------
    def pack_b(params, active, fout_pad):
        b = jnp.zeros((T, n_pad, fout_pad), jnp.float32)
        for d in range(T):
            rel_in = [r for r in active if rel_sd[r][1] == d]
            if not rel_in:
                continue
            bsum = sum(params[rels[r]][1] for r in rel_in)        # [1, fout]
            rows = num_nodes[ntypes[d]]
            b = b.at[d, :rows, :bsum.shape[1]].set(
                jnp.broadcast_to(bsum, (rows, bsum.shape[1])))
        return b

    b1 = pack_b(params1, act1, hid_pad)
    b2 = pack_b(params2, act2, out_pad)

    static = dict(num_types=T, n_pad=n_pad, hid_pad=hid_pad, out_pad=out_pad,
                  src_rels1=src_rels1, src_rels2=src_rels2)
    return (x, adj, ndv, w1, w2, b1, b2), static


# ----------------------------------------------------------------------------
# References
# ----------------------------------------------------------------------------
def matched_reference(arrs, static):
    """Pure-JAX mirror of the fused kernel (same packed operands / numerics)."""
    x, adj, ndv, w1, w2, b1, b2 = arrs
    outs = _hgcn_body(lambda s: x[s], lambda r: adj[r], lambda r: ndv[r],
                      lambda s: w1[s], lambda s: w2[s],
                      lambda d: b1[d], lambda d: b2[d], static)
    return jnp.stack(outs)


def dgl_reference(graph, feats, params1, params2):
    """Unpadded f32 reference with exact DGL HeteroGraphConv/GraphConv math."""
    def layer(fe, params):
        out = {}
        for rel, (st, dt, adjT) in graph.items():
            if st not in fe:
                continue
            wl, bl = params[rel]
            ns, nd = degree_norms(adjT)
            c = nd * (adjT @ ((fe[st] * ns) @ wl)) + bl
            out[dt] = c if dt not in out else out[dt] + c
        return out
    h = layer(feats, params1)
    h = {k: jnp.maximum(v, 0.0) for k, v in h.items()}
    return layer(h, params2)


def init_layer_params(key, rels, fin, fout):
    """Xavier-uniform weights, zero bias (DGL GraphConv defaults)."""
    params = {}
    limit = (6.0 / (fin + fout)) ** 0.5
    for rel in rels:
        key, k = jax.random.split(key)
        w = jax.random.uniform(k, (fin, fout), jnp.float32, -limit, limit)
        b = jnp.zeros((1, fout), jnp.float32)
        params[rel] = (w, b)
    return key, params


# ----------------------------------------------------------------------------
if __name__ == "__main__":
    key = jax.random.PRNGKey(0)

    # Small synthetic heterograph: node types "user"/"item", three relations.
    N = {"user": 16, "item": 12}
    in_feats, hid_feats, out_feats = 8, 16, 8
    rel_defs = {
        "follows":  ("user", "user"),
        "rates":    ("user", "item"),
        "rated-by": ("item", "user"),
    }

    key, *adj_keys = jax.random.split(key, len(rel_defs) + 1)
    graph = {}
    for (rel, (st, dt)), k in zip(rel_defs.items(), adj_keys):
        a = (jax.random.uniform(k, (N[st], N[dt])) < 0.3).astype(jnp.float32)
        graph[rel] = (st, dt, a.T)               # store A^T  [N_dst, N_src]

    key, ku, ki = jax.random.split(key, 3)
    inputs = {
        "user": jax.random.normal(ku, (N["user"], in_feats), jnp.float32),
        "item": jax.random.normal(ki, (N["item"], in_feats), jnp.float32),
    }

    rels = list(rel_defs)
    ntypes = ["user", "item"]
    key, params1 = init_layer_params(key, rels, in_feats, hid_feats)
    key, params2 = init_layer_params(key, rels, hid_feats, out_feats)

    # ---- pack: per-stage 128-lane padding, 16-row (bf16 sublane) node padding
    n_pad = _round_up(max(N.values()), 16)
    in_pad = _round_up(in_feats, 128)
    hid_pad = _round_up(hid_feats, 128)
    out_pad = _round_up(out_feats, 128)
    arrs, static = pack_hgcn(graph, inputs, params1, params2, ntypes, rels, N,
                             n_pad, in_pad, hid_pad, out_pad)

    # ---- fused Pallas forward (one kernel launch for the whole module) ------
    out_pack = hgcn_fused_forward(arrs, static)
    jax.block_until_ready(out_pack)

    # ---- check 1: kernel plumbing vs. pure-JAX mirror of the packed math ----
    ref_pack = matched_reference(arrs, static)
    assert jnp.allclose(out_pack, ref_pack, rtol=2e-2, atol=2e-2), \
        "kernel != packed reference"

    # ---- check 2: fidelity to DGL f32 semantics (bf16 MXU => rounding-level)
    ref = dgl_reference(graph, inputs, params1, params2)
    tidx = {t: i for i, t in enumerate(ntypes)}
    for t, rv in ref.items():
        ov = out_pack[tidx[t], :N[t], :out_feats]
        assert ov.shape == rv.shape
        assert jnp.allclose(ov, rv, rtol=1e-1, atol=1e-1), \
            f"mismatch vs f32 reference for node type {t}"

    print("KERNEL_OK")
</pallas_src>

<mosaic_0001>
module attributes {stable_mosaic.version = 11 : i64} {
  func.func @kernel(%arg0: i32, %arg1: memref<2x16x128xbf16, #tpu.memory_space<vmem>>, %arg2: memref<3x16x16xbf16, #tpu.memory_space<vmem>>, %arg3: memref<3x16x1xf32, #tpu.memory_space<vmem>>, %arg4: memref<2x128x256xbf16, #tpu.memory_space<vmem>>, %arg5: memref<2x128x256xbf16, #tpu.memory_space<vmem>>, %arg6: memref<2x16x128xf32, #tpu.memory_space<vmem>>, %arg7: memref<2x16x128xf32, #tpu.memory_space<vmem>>, %arg8: memref<2x16x128xf32, #tpu.memory_space<vmem>>) attributes {dimension_semantics = [#tpu.dimension_semantics<arbitrary>], iteration_bounds = array<i64: 1>, scalar_prefetch = 0 : i64, scratch_operands = 0 : i64, tpu.core_type = #tpu.core_type<tc>, window_params = [{pipeline_mode = #tpu.pipeline_mode<synchronous>, transform_indices = @transform_0, window_bounds = array<i64: 2, 16, 128>}, {pipeline_mode = #tpu.pipeline_mode<synchronous>, transform_indices = @transform_1, window_bounds = array<i64: 3, 16, 16>}, {pipeline_mode = #tpu.pipeline_mode<synchronous>, transform_indices = @transform_2, window_bounds = array<i64: 3, 16, 1>}, {pipeline_mode = #tpu.pipeline_mode<synchronous>, transform_indices = @transform_3, window_bounds = array<i64: 2, 128, 256>}, {pipeline_mode = #tpu.pipeline_mode<synchronous>, transform_indices = @transform_4, window_bounds = array<i64: 2, 128, 256>}, {pipeline_mode = #tpu.pipeline_mode<synchronous>, transform_indices = @transform_5, window_bounds = array<i64: 2, 16, 128>}, {pipeline_mode = #tpu.pipeline_mode<synchronous>, transform_indices = @transform_6, window_bounds = array<i64: 2, 16, 128>}, {pipeline_mode = #tpu.pipeline_mode<synchronous>, transform_indices = @transform_7, window_bounds = array<i64: 2, 16, 128>}]} {
    %c0 = arith.constant 0 : index
    %c0_0 = arith.constant 0 : index
    %c0_1 = arith.constant 0 : index
    %0 = vector.load %arg1[%c0, %c0_0, %c0_1] : memref<2x16x128xbf16, #tpu.memory_space<vmem>>, vector<1x16x128xbf16>
    %1 = vector.shape_cast %0 : vector<1x16x128xbf16> to vector<16x128xbf16>
    %c0_2 = arith.constant 0 : index
    %c0_3 = arith.constant 0 : index
    %c0_4 = arith.constant 0 : index
    %2 = vector.load %arg4[%c0_2, %c0_3, %c0_4] : memref<2x128x256xbf16, #tpu.memory_space<vmem>>, vector<1x128x256xbf16>
    %3 = vector.shape_cast %2 : vector<1x128x256xbf16> to vector<128x256xbf16>
    %cst = arith.constant dense<0.000000e+00> : vector<16x256xf32>
    %4 = tpu.matmul %1, %3, %cst {dimension_numbers = #tpu.dot_dimension_numbers<[1], [0], [0], [1], [0, 0, 1, 1], [], []>} : vector<16x128xbf16>, vector<128x256xbf16>, vector<16x256xf32> -> vector<16x256xf32>
    %5 = arith.truncf %4 : vector<16x256xf32> to vector<16x256xbf16>
    %6 = vector.extract_strided_slice %5 {offsets = [0, 0], sizes = [16, 128], strides = [1, 1]} : vector<16x256xbf16> to vector<16x128xbf16>
    %c0_5 = arith.constant 0 : index
    %c0_6 = arith.constant 0 : index
    %c0_7 = arith.constant 0 : index
    %7 = vector.load %arg3[%c0_5, %c0_6, %c0_7] : memref<3x16x1xf32, #tpu.memory_space<vmem>>, vector<1x16x1xf32>
    %8 = vector.shape_cast %7 : vector<1x16x1xf32> to vector<16x1xf32>
    %c0_8 = arith.constant 0 : index
    %c0_9 = arith.constant 0 : index
    %c0_10 = arith.constant 0 : index
    %9 = vector.load %arg2[%c0_8, %c0_9, %c0_10] : memref<3x16x16xbf16, #tpu.memory_space<vmem>>, vector<1x16x16xbf16>
    %10 = vector.shape_cast %9 : vector<1x16x16xbf16> to vector<16x16xbf16>
    %cst_11 = arith.constant dense<0.000000e+00> : vector<16x128xf32>
    %11 = tpu.matmul %10, %6, %cst_11 {dimension_numbers = #tpu.dot_dimension_numbers<[1], [0], [0], [1], [0, 0, 1, 1], [], []>} : vector<16x16xbf16>, vector<16x128xbf16>, vector<16x128xf32> -> vector<16x128xf32>
    %12 = vector.broadcast %8 : vector<16x1xf32> to vector<16x128xf32>
    %13 = arith.mulf %12, %11 : vector<16x128xf32>
    %14 = vector.extract_strided_slice %5 {offsets = [0, 128], sizes = [16, 128], strides = [1, 1]} : vector<16x256xbf16> to vector<16x128xbf16>
    %c1 = arith.constant 1 : index
    %c0_12 = arith.constant 0 : index
    %c0_13 = arith.constant 0 : index
    %15 = vector.load %arg3[%c1, %c0_12, %c0_13] : memref<3x16x1xf32, #tpu.memory_space<vmem>>, vector<1x16x1xf32>
    %16 = vector.shape_cast %15 : vector<1x16x1xf32> to vector<16x1xf32>
    %c1_14 = arith.constant 1 : index
    %c0_15 = arith.constant 0 : index
    %c0_16 = arith.constant 0 : index
    %17 = vector.load %arg2[%c1_14, %c0_15, %c0_16] : memref<3x16x16xbf16, #tpu.memory_space<vmem>>, vector<1x16x16xbf16>
    %18 = vector.shape_cast %17 : vector<1x16x16xbf16> to vector<16x16xbf16>
    %cst_17 = arith.constant dense<0.000000e+00> : vector<16x128xf32>
    %19 = tpu.matmul %18, %14, %cst_17 {dimension_numbers = #tpu.dot_dimension_numbers<[1], [0], [0], [1], [0, 0, 1, 1], [], []>} : vector<16x16xbf16>, vector<16x128xbf16>, vector<16x128xf32> -> vector<16x128xf32>
    %20 = vector.broadcast %16 : vector<16x1xf32> to vector<16x128xf32>
    %21 = arith.mulf %20, %19 : vector<16x128xf32>
    %c1_18 = arith.constant 1 : index
    %c0_19 = arith.constant 0 : index
    %c0_20 = arith.constant 0 : index
    %22 = vector.load %arg1[%c1_18, %c0_19, %c0_20] : memref<2x16x128xbf16, #tpu.memory_space<vmem>>, vector<1x16x128xbf16>
    %23 = vector.shape_cast %22 : vector<1x16x128xbf16> to vector<16x128xbf16>
    %c1_21 = arith.constant 1 : index
    %c0_22 = arith.constant 0 : index
    %c0_23 = arith.constant 0 : index
    %24 = vector.load %arg4[%c1_21, %c0_22, %c0_23] : memref<2x128x256xbf16, #tpu.memory_space<vmem>>, vector<1x128x256xbf16>
    %25 = vector.shape_cast %24 : vector<1x128x256xbf16> to vector<128x256xbf16>
    %cst_24 = arith.constant dense<0.000000e+00> : vector<16x256xf32>
    %26 = tpu.matmul %23, %25, %cst_24 {dimension_numbers = #tpu.dot_dimension_numbers<[1], [0], [0], [1], [0, 0, 1, 1], [], []>} : vector<16x128xbf16>, vector<128x256xbf16>, vector<16x256xf32> -> vector<16x256xf32>
    %27 = arith.truncf %26 : vector<16x256xf32> to vector<16x256xbf16>
    %28 = vector.extract_strided_slice %27 {offsets = [0, 0], sizes = [16, 128], strides = [1, 1]} : vector<16x256xbf16> to vector<16x128xbf16>
    %c2 = arith.constant 2 : index
    %c0_25 = arith.constant 0 : index
    %c0_26 = arith.constant 0 : index
    %29 = vector.load %arg3[%c2, %c0_25, %c0_26] : memref<3x16x1xf32, #tpu.memory_space<vmem>>, vector<1x16x1xf32>
    %30 = vector.shape_cast %29 : vector<1x16x1xf32> to vector<16x1xf32>
    %c2_27 = arith.constant 2 : index
    %c0_28 = arith.constant 0 : index
    %c0_29 = arith.constant 0 : index
    %31 = vector.load %arg2[%c2_27, %c0_28, %c0_29] : memref<3x16x16xbf16, #tpu.memory_space<vmem>>, vector<1x16x16xbf16>
    %32 = vector.shape_cast %31 : vector<1x16x16xbf16> to vector<16x16xbf16>
    %cst_30 = arith.constant dense<0.000000e+00> : vector<16x128xf32>
    %33 = tpu.matmul %32, %28, %cst_30 {dimension_numbers = #tpu.dot_dimension_numbers<[1], [0], [0], [1], [0, 0, 1, 1], [], []>} : vector<16x16xbf16>, vector<16x128xbf16>, vector<16x128xf32> -> vector<16x128xf32>
    %34 = vector.broadcast %30 : vector<16x1xf32> to vector<16x128xf32>
    %35 = arith.mulf %34, %33 : vector<16x128xf32>
    %36 = arith.addf %13, %35 : vector<16x128xf32>
    %c0_31 = arith.constant 0 : index
    %c0_32 = arith.constant 0 : index
    %c0_33 = arith.constant 0 : index
    %37 = vector.load %arg6[%c0_31, %c0_32, %c0_33] : memref<2x16x128xf32, #tpu.memory_space<vmem>>, vector<1x16x128xf32>
    %38 = vector.shape_cast %37 : vector<1x16x128xf32> to vector<16x128xf32>
    %39 = arith.addf %36, %38 : vector<16x128xf32>
    %c1_34 = arith.constant 1 : index
    %c0_35 = arith.constant 0 : index
    %c0_36 = arith.constant 0 : index
    %40 = vector.load %arg6[%c1_34, %c0_35, %c0_36] : memref<2x16x128xf32, #tpu.memory_space<vmem>>, vector<1x16x128xf32>
    %41 = vector.shape_cast %40 : vector<1x16x128xf32> to vector<16x128xf32>
    %42 = arith.addf %21, %41 : vector<16x128xf32>
    %cst_37 = arith.constant 0.000000e+00 : f32
    %43 = vector.broadcast %cst_37 : f32 to vector<16x128xf32>
    %44 = arith.maximumf %39, %43 : vector<16x128xf32>
    %45 = arith.truncf %44 : vector<16x128xf32> to vector<16x128xbf16>
    %cst_38 = arith.constant 0.000000e+00 : f32
    %46 = vector.broadcast %cst_38 : f32 to vector<16x128xf32>
    %47 = arith.maximumf %42, %46 : vector<16x128xf32>
    %48 = arith.truncf %47 : vector<16x128xf32> to vector<16x128xbf16>
    %c0_39 = arith.constant 0 : index
    %c0_40 = arith.constant 0 : index
    %c0_41 = arith.constant 0 : index
    %49 = vector.load %arg5[%c0_39, %c0_40, %c0_41] : memref<2x128x256xbf16, #tpu.memory_space<vmem>>, vector<1x128x256xbf16>
    %50 = vector.shape_cast %49 : vector<1x128x256xbf16> to vector<128x256xbf16>
    %cst_42 = arith.constant dense<0.000000e+00> : vector<16x256xf32>
    %51 = tpu.matmul %45, %50, %cst_42 {dimension_numbers = #tpu.dot_dimension_numbers<[1], [0], [0], [1], [0, 0, 1, 1], [], []>} : vector<16x128xbf16>, vector<128x256xbf16>, vector<16x256xf32> -> vector<16x256xf32>
    %52 = arith.truncf %51 : vector<16x256xf32> to vector<16x256xbf16>
    %53 = vector.extract_strided_slice %52 {offsets = [0, 0], sizes = [16, 128], strides = [1, 1]} : vector<16x256xbf16> to vector<16x128xbf16>
    %c0_43 = arith.constant 0 : index
    %c0_44 = arith.constant 0 : index
    %c0_45 = arith.constant 0 : index
    %54 = vector.load %arg3[%c0_43, %c0_44, %c0_45] : memref<3x16x1xf32, #tpu.memory_space<vmem>>, vector<1x16x1xf32>
    %55 = vector.shape_cast %54 : vector<1x16x1xf32> to vector<16x1xf32>
    %c0_46 = arith.constant 0 : index
    %c0_47 = arith.constant 0 : index
    %c0_48 = arith.constant 0 : index
    %56 = vector.load %arg2[%c0_46, %c0_47, %c0_48] : memref<3x16x16xbf16, #tpu.memory_space<vmem>>, vector<1x16x16xbf16>
    %57 = vector.shape_cast %56 : vector<1x16x16xbf16> to vector<16x16xbf16>
    %cst_49 = arith.constant dense<0.000000e+00> : vector<16x128xf32>
    %58 = tpu.matmul %57, %53, %cst_49 {dimension_numbers = #tpu.dot_dimension_numbers<[1], [0], [0], [1], [0, 0, 1, 1], [], []>} : vector<16x16xbf16>, vector<16x128xbf16>, vector<16x128xf32> -> vector<16x128xf32>
    %59 = vector.broadcast %55 : vector<16x1xf32> to vector<16x128xf32>
    %60 = arith.mulf %59, %58 : vector<16x128xf32>
    %61 = vector.extract_strided_slice %52 {offsets = [0, 128], sizes = [16, 128], strides = [1, 1]} : vector<16x256xbf16> to vector<16x128xbf16>
    %c1_50 = arith.constant 1 : index
    %c0_51 = arith.constant 0 : index
    %c0_52 = arith.constant 0 : index
    %62 = vector.load %arg3[%c1_50, %c0_51, %c0_52] : memref<3x16x1xf32, #tpu.memory_space<vmem>>, vector<1x16x1xf32>
    %63 = vector.shape_cast %62 : vector<1x16x1xf32> to vector<16x1xf32>
    %c1_53 = arith.constant 1 : index
    %c0_54 = arith.constant 0 : index
    %c0_55 = arith.constant 0 : index
    %64 = vector.load %arg2[%c1_53, %c0_54, %c0_55] : memref<3x16x16xbf16, #tpu.memory_space<vmem>>, vector<1x16x16xbf16>
    %65 = vector.shape_cast %64 : vector<1x16x16xbf16> to vector<16x16xbf16>
    %cst_56 = arith.constant dense<0.000000e+00> : vector<16x128xf32>
    %66 = tpu.matmul %65, %61, %cst_56 {dimension_numbers = #tpu.dot_dimension_numbers<[1], [0], [0], [1], [0, 0, 1, 1], [], []>} : vector<16x16xbf16>, vector<16x128xbf16>, vector<16x128xf32> -> vector<16x128xf32>
    %67 = vector.broadcast %63 : vector<16x1xf32> to vector<16x128xf32>
    %68 = arith.mulf %67, %66 : vector<16x128xf32>
    %c1_57 = arith.constant 1 : index
    %c0_58 = arith.constant 0 : index
    %c0_59 = arith.constant 0 : index
    %69 = vector.load %arg5[%c1_57, %c0_58, %c0_59] : memref<2x128x256xbf16, #tpu.memory_space<vmem>>, vector<1x128x256xbf16>
    %70 = vector.shape_cast %69 : vector<1x128x256xbf16> to vector<128x256xbf16>
    %cst_60 = arith.constant dense<0.000000e+00> : vector<16x256xf32>
    %71 = tpu.matmul %48, %70, %cst_60 {dimension_numbers = #tpu.dot_dimension_numbers<[1], [0], [0], [1], [0, 0, 1, 1], [], []>} : vector<16x128xbf16>, vector<128x256xbf16>, vector<16x256xf32> -> vector<16x256xf32>
    %72 = arith.truncf %71 : vector<16x256xf32> to vector<16x256xbf16>
    %73 = vector.extract_strided_slice %72 {offsets = [0, 0], sizes = [16, 128], strides = [1, 1]} : vector<16x256xbf16> to vector<16x128xbf16>
    %c2_61 = arith.constant 2 : index
    %c0_62 = arith.constant 0 : index
    %c0_63 = arith.constant 0 : index
    %74 = vector.load %arg3[%c2_61, %c0_62, %c0_63] : memref<3x16x1xf32, #tpu.memory_space<vmem>>, vector<1x16x1xf32>
    %75 = vector.shape_cast %74 : vector<1x16x1xf32> to vector<16x1xf32>
    %c2_64 = arith.constant 2 : index
    %c0_65 = arith.constant 0 : index
    %c0_66 = arith.constant 0 : index
    %76 = vector.load %arg2[%c2_64, %c0_65, %c0_66] : memref<3x16x16xbf16, #tpu.memory_space<vmem>>, vector<1x16x16xbf16>
    %77 = vector.shape_cast %76 : vector<1x16x16xbf16> to vector<16x16xbf16>
    %cst_67 = arith.constant dense<0.000000e+00> : vector<16x128xf32>
    %78 = tpu.matmul %77, %73, %cst_67 {dimension_numbers = #tpu.dot_dimension_numbers<[1], [0], [0], [1], [0, 0, 1, 1], [], []>} : vector<16x16xbf16>, vector<16x128xbf16>, vector<16x128xf32> -> vector<16x128xf32>
    %79 = vector.broadcast %75 : vector<16x1xf32> to vector<16x128xf32>
    %80 = arith.mulf %79, %78 : vector<16x128xf32>
    %81 = arith.addf %60, %80 : vector<16x128xf32>
    %c0_68 = arith.constant 0 : index
    %c0_69 = arith.constant 0 : index
    %c0_70 = arith.constant 0 : index
    %82 = vector.load %arg7[%c0_68, %c0_69, %c0_70] : memref<2x16x128xf32, #tpu.memory_space<vmem>>, vector<1x16x128xf32>
    %83 = vector.shape_cast %82 : vector<1x16x128xf32> to vector<16x128xf32>
    %84 = arith.addf %81, %83 : vector<16x128xf32>
    %c1_71 = arith.constant 1 : index
    %c0_72 = arith.constant 0 : index
    %c0_73 = arith.constant 0 : index
    %85 = vector.load %arg7[%c1_71, %c0_72, %c0_73] : memref<2x16x128xf32, #tpu.memory_space<vmem>>, vector<1x16x128xf32>
    %86 = vector.shape_cast %85 : vector<1x16x128xf32> to vector<16x128xf32>
    %87 = arith.addf %68, %86 : vector<16x128xf32>
    %c0_74 = arith.constant 0 : index
    %c0_75 = arith.constant 0 : index
    %c0_76 = arith.constant 0 : index
    %88 = vector.load %arg8[%c0_74, %c0_75, %c0_76] : memref<2x16x128xf32, #tpu.memory_space<vmem>>, vector<1x16x128xf32>
    %89 = vector.shape_cast %88 : vector<1x16x128xf32> to vector<16x128xf32>
    %90 = vector.shape_cast %84 : vector<16x128xf32> to vector<1x16x128xf32>
    tpu.vector_store %arg8[%c0_74, %c0_75, %c0_76], %90 {strides = array<i32>} : memref<2x16x128xf32, #tpu.memory_space<vmem>>, vector<1x16x128xf32>,
    %c1_77 = arith.constant 1 : index
    %c0_78 = arith.constant 0 : index
    %c0_79 = arith.constant 0 : index
    %91 = vector.load %arg8[%c1_77, %c0_78, %c0_79] : memref<2x16x128xf32, #tpu.memory_space<vmem>>, vector<1x16x128xf32>
    %92 = vector.shape_cast %91 : vector<1x16x128xf32> to vector<16x128xf32>
    %93 = vector.shape_cast %87 : vector<16x128xf32> to vector<1x16x128xf32>
    tpu.vector_store %arg8[%c1_77, %c0_78, %c0_79], %93 {strides = array<i32>} : memref<2x16x128xf32, #tpu.memory_space<vmem>>, vector<1x16x128xf32>,
    return
  }
  func.func @transform_0(%arg0: i32) -> (i32, i32, i32) {
    %c0_i32 = arith.constant 0 : i32
    %c0_i32_0 = arith.constant 0 : i32
    %c0_i32_1 = arith.constant 0 : i32
    %c0_i32_2 = arith.constant 0 : i32
    return %c0_i32, %c0_i32_0, %c0_i32_1 : i32, i32, i32
  }
  func.func @transform_1(%arg0: i32) -> (i32, i32, i32) {
    %c0_i32 = arith.constant 0 : i32
    %c0_i32_0 = arith.constant 0 : i32
    %c0_i32_1 = arith.constant 0 : i32
    %c0_i32_2 = arith.constant 0 : i32
    return %c0_i32, %c0_i32_0, %c0_i32_1 : i32, i32, i32
  }
  func.func @transform_2(%arg0: i32) -> (i32, i32, i32) {
    %c0_i32 = arith.constant 0 : i32
    %c0_i32_0 = arith.constant 0 : i32
    %c0_i32_1 = arith.constant 0 : i32
    %c0_i32_2 = arith.constant 0 : i32
    return %c0_i32, %c0_i32_0, %c0_i32_1 : i32, i32, i32
  }
  func.func @transform_3(%arg0: i32) -> (i32, i32, i32) {
    %c0_i32 = arith.constant 0 : i32
    %c0_i32_0 = arith.constant 0 : i32
    %c0_i32_1 = arith.constant 0 : i32
    %c0_i32_2 = arith.constant 0 : i32
    return %c0_i32, %c0_i32_0, %c0_i32_1 : i32, i32, i32
  }
  func.func @transform_4(%arg0: i32) -> (i32, i32, i32) {
    %c0_i32 = arith.constant 0 : i32
    %c0_i32_0 = arith.constant 0 : i32
    %c0_i32_1 = arith.constant 0 : i32
    %c0_i32_2 = arith.constant 0 : i32
    return %c0_i32, %c0_i32_0, %c0_i32_1 : i32, i32, i32
  }
  func.func @transform_5(%arg0: i32) -> (i32, i32, i32) {
    %c0_i32 = arith.constant 0 : i32
    %c0_i32_0 = arith.constant 0 : i32
    %c0_i32_1 = arith.constant 0 : i32
    %c0_i32_2 = arith.constant 0 : i32
    return %c0_i32, %c0_i32_0, %c0_i32_1 : i32, i32, i32
  }
  func.func @transform_6(%arg0: i32) -> (i32, i32, i32) {
    %c0_i32 = arith.constant 0 : i32
    %c0_i32_0 = arith.constant 0 : i32
    %c0_i32_1 = arith.constant 0 : i32
    %c0_i32_2 = arith.constant 0 : i32
    return %c0_i32, %c0_i32_0, %c0_i32_1 : i32, i32, i32
  }
  func.func @transform_7(%arg0: i32) -> (i32, i32, i32) {
    %c0_i32 = arith.constant 0 : i32
    %c0_i32_0 = arith.constant 0 : i32
    %c0_i32_1 = arith.constant 0 : i32
    %c0_i32_2 = arith.constant 0 : i32
    return %c0_i32, %c0_i32_0, %c0_i32_1 : i32, i32, i32
  }
}

</mosaic_0001>

<bundles_post_ra>
// kernel: tpu_custom_call.1
= control target key start
LH: loop header
LB: loop body
LE: loop exit
PB: predicated region body
PF: predicated region fallthrough
CT: control target
= control target key end

     0   :  { %12 = vsyncpa [#allocation3], 0  ;;  %s1584_s0 = inlined_call_operand.hbm [shape: bf16[2,16,128], index: 0, kind: input, shape index: {}]   ;;  %s1585_s1 = inlined_call_operand.vmem [shape: bf16[3,16,16], index: 1, kind: input, shape index: {}]   ;;  %s1586_s2 = inlined_call_operand.vmem [shape: f32[3,16,1], index: 2, kind: input, shape index: {}]   ;;  %s1587_s3 = inlined_call_operand.hbm [shape: bf16[2,128,256], index: 3, kind: input, shape index: {}]   ;;  %s1588_s4 = inlined_call_operand.hbm [shape: bf16[2,128,256], index: 4, kind: input, shape index: {}]   ;;  %s1589_s5 = inlined_call_operand.vmem [shape: f32[2,16,128], index: 5, kind: input, shape index: {}]   ;;  %s1590_s6 = inlined_call_operand.hbm [shape: f32[2,16,128], index: 6, kind: input, shape index: {}]   ;;  %s1591_s7 = inlined_call_operand.hbm [shape: f32[2,16,128], index: 7, kind: output, shape index: {}]  }
   0x1   :  { %13 = vsyncpa [#allocation6], 0 }
   0x2   :  { %14 = vsyncpa [#allocation9], 0 }
   0x3   :  { %15 = vsyncpa [#allocation4], 0  ;;  %s1397_s24 = smov [#allocation5]  }
   0x4   :  { %s37_s25 = sshll.u32 %s1397_s24, 4  ;;  %s38_s25 = int_to_ptr.vmem [resolvable:$true] %s37_s25 }
   0x5   :  { %s1297_s26 = scalar_lea.vmem %s38_s25, 4096  ;;  %p1302_p1 = scmp.lt.s32.totalorder %s38_s25, %s38_s25 }
   0x6   :  { %p1298_p0 = scmp.ne.s32.totalorder %s38_s25, %s1297_s26  ;;  %p1303_p2 = scmp.lt.s32.totalorder %s1297_s26, %s1297_s26 }
   0x8   :  { %p1304_p3 = por %p1303_p2, %p1302_p1 }
   0xa   :  { %p1305_p4 = pnand %p1304_p3, %p1298_p0 }
   0xc   :  { %1308 = shalt.err (!%p1305_p4)
}
   0xd   :  { %s1398_s27 = smov 128   ;;  %s1399_s28 = smov 8  }
   0xe   :  { %43 = dma.hbm_to_vmem [thread:$0]  %s1587_s3, 4096, %s38_s25, [#allocation6], %s1398_s27, %s1398_s27, %s1399_s28  }
   0xf   :  { %s1400_s8 = smov [#allocation2]  }
  0x10   :  { %s21_s9 = sshll.u32 %s1400_s8, 4  ;;  %s22_s9 = int_to_ptr.vmem [resolvable:$true] %s21_s9 }
  0x11   :  { %s1317_s10 = scalar_lea.vmem %s22_s9, 256  ;;  %p1322_p6 = scmp.lt.s32.totalorder %s22_s9, %s22_s9 }
  0x12   :  { %p1318_p5 = scmp.ne.s32.totalorder %s22_s9, %s1317_s10  ;;  %p1323_p7 = scmp.lt.s32.totalorder %s1317_s10, %s1317_s10 }
  0x14   :  { %p1324_p8 = por %p1323_p7, %p1322_p6 }
  0x16   :  { %p1325_p9 = pnand %p1324_p8, %p1318_p5 }
  0x18   :  { %1328 = shalt.err (!%p1325_p9)
}
  0x19   :  { %s1401_s11 = smov 64   ;;  %s1402_s12 = smov 4  }
  0x1a   :  { %27 = dma.hbm_to_vmem [thread:$0]  %s1584_s0, 256, %s22_s9, [#allocation3], %s1401_s11, %s1401_s11, %s1402_s12  }
  0x1b   :  { %s1403_s15 = smov [#allocation7]   ;;  %s1404_s17 = smov [#allocation8]  }
  0x1c   :  { %s49_s16 = sshll.u32 %s1403_s15, 4  ;;  %s63_s3 = sshll.u32 %s1404_s17, 4  ;;  %s50_s16 = int_to_ptr.vmem [resolvable:$true] %s49_s16  ;;  %s64_s3 = int_to_ptr.vmem [resolvable:$true] %s63_s3 }
  0x1d   :  { %s1337_s18 = scalar_lea.vmem %s50_s16, 4096  ;;  %p1342_p11 = scmp.lt.s32.totalorder %s50_s16, %s50_s16 }
  0x1e   :  { %p1338_p10 = scmp.ne.s32.totalorder %s50_s16, %s1337_s18  ;;  %p1343_p12 = scmp.lt.s32.totalorder %s1337_s18, %s1337_s18 }
  0x20   :  { %p1344_p13 = por %p1343_p12, %p1342_p11 }
  0x22   :  { %p1345_p0 = pnand %p1344_p13, %p1338_p10 }
  0x24   :  { %1348 = shalt.err (!%p1345_p0)
}
  0x25   :  { %55 = dma.hbm_to_vmem [thread:$0]  %s1588_s4, 4096, %s50_s16, [#allocation6], %s1398_s27, %s1398_s27, %s1399_s28  }
  0x26   :  { %s1357_s0 = scalar_lea.vmem %s64_s3, 512  ;;  %p1362_p2 = scmp.lt.s32.totalorder %s64_s3, %s64_s3 }
  0x27   :  { %p1358_p1 = scmp.ne.s32.totalorder %s64_s3, %s1357_s0  ;;  %p1363_p3 = scmp.lt.s32.totalorder %s1357_s0, %s1357_s0 }
  0x29   :  { %p1364_p4 = por %p1363_p3, %p1362_p2 }
  0x2b   :  { %p1365_p5 = pnand %p1364_p4, %p1358_p1 }
  0x2d   :  { %1368 = shalt.err (!%p1365_p5)
}
  0x2e   :  { %69 = dma.hbm_to_vmem [thread:$0]  %s1590_s6, 512, %s64_s3, [#allocation9], %s1398_s27, %s1398_s27, %s1399_s28  }
  0x2f   :  { %1389 = dma.done.wait [#allocation3], 256  }
  0x30   :  { %1390 = vsyncadd [#allocation3], 4294967040 }
  0x31   :  { %1391 = dma.done.wait [#allocation6], 8192  }
  0x32   :  { %1392 = vsyncadd [#allocation6], 4294959104 }
  0x33   :  { %1393 = dma.done.wait [#allocation9], 512  }
  0x34   :  { %1394 = vsyncadd [#allocation9], 4294966784  ;;  %v1405_v0 = vmov 0   ;;  %v1188_v1 = vld [vmem:[#allocation5 + $0x74] ss:$8 sps:$4 sm:$0xff]   ;;  %v1406_v18 = vmov 0.0  }
  0x35   :  { %219 = vmatprep.mubr.bf16.mxu0 %v1405_v0  ;;  %1186 = vset.pattern.permute.xlu0 %v1405_v0  ;;  %v1190_v2 = vld [vmem:[#allocation5 + $0x70] ss:$8 sps:$4 sm:$0xff]   ;;  %v1191_v3 = vld [vmem:[#allocation5 + $0x64] ss:$8 sps:$4 sm:$0xff]   ;;  %v1193_v4 = vld [vmem:[#allocation5 + $0x60] ss:$8 sps:$4 sm:$0xff]  }
  0x36   :  { %1187 = vset.pattern.permute.xlu1 %v1405_v0  ;;  %187 = vmatprep.subr.bf16.mxu0 %v1188_v1  ;;  %v1194_v5 = vld [vmem:[#allocation5 + $0x54] ss:$8 sps:$4 sm:$0xff]   ;;  %v1196_v6 = vld [vmem:[#allocation5 + $0x50] ss:$8 sps:$4 sm:$0xff]   ;;  %v1197_v7 = vld [vmem:[#allocation5 + $0x44] ss:$8 sps:$4 sm:$0xff]  }
  0x37   :  { %188 = vmatpush1.bf16.msra.mxu0 %v1190_v2  ;;  %v1199_v8 = vld [vmem:[#allocation5 + $0x40] ss:$8 sps:$4 sm:$0xff]   ;;  %v1200_v9 = vld [vmem:[#allocation5 + $0x34] ss:$8 sps:$4 sm:$0xff]   ;;  %v1202_v10 = vld [vmem:[#allocation5 + $0x30] ss:$8 sps:$4 sm:$0xff]   ;;  %1144 = vmatprep.subr.bf16.mxu1 %v1406_v18 }
  0x38   :  { %189 = vmatprep.subr.bf16.mxu0 %v1191_v3  ;;  %v1203_v11 = vld [vmem:[#allocation5 + $0x24] ss:$8 sps:$4 sm:$0xff]   ;;  %v1205_v12 = vld [vmem:[#allocation5 + $0x20] ss:$8 sps:$4 sm:$0xff]   ;;  %v1206_v13 = vld [vmem:[#allocation5 + $0x14] ss:$8 sps:$4 sm:$0xff]  }
  0x39   :  { %v1208_v14 = vld [vmem:[#allocation5 + $0x10] ss:$8 sps:$4 sm:$0xff]   ;;  %v1209_v15 = vld [vmem:[#allocation5 + $0x4] ss:$8 sps:$4 sm:$0xff]   ;;  %v1211_v16 = vld [vmem:[#allocation5] ss:$8 sps:$4 sm:$0xff]  }
  0x3a   :  { %v1212_v17 = vld [vmem:[#allocation2] sm:$0xff]   ;;  %vm1407_vm0 = vmmov 0   ;;  %v233_v21 = vld [vmem:[%s1586_s2 + $0x8] sm:$0xff]  ;;  %v1060_v23 = vld [vmem:[%s1586_s2 + $0x10] sm:$0xff]  ;;  %vm241_vm1 = vcmask 130048  }
  0x3b   :  { %190 = vmatpush1.bf16.msra.mxu0 %v1193_v4  ;;  %1146 = vmatprep.mubr.msk.bf16.mxu1 %vm1407_vm0, %v1406_v18  ;;  %v232_v19 = vld [vmem:[%s1586_s2] sm:$0xff]  ;;  %v1084_v22 = vld [vmem:[%s1586_s2 + $0x28] sm:$0xff]  ;;  %v1061_v24 = vld [vmem:[%s1586_s2 + $0x18] sm:$0xff] }
  0x3c   :  { %191 = vmatprep.subr.bf16.mxu0 %v1194_v5  ;;  %v1083_v20 = vld [vmem:[%s1586_s2 + $0x20] sm:$0xff]  ;;  %288 = vperm.xlu0 %1186, %v232_v19   ;;  %v1500_v32 = vld [vmem:[%s1585_s1 + $0x8] sm:$0xff]   ;;  %v1219_v34 = vld [vmem:[#allocation5 + $0xe4] ss:$8 sps:$4 sm:$0xff]  }
  0x3d   :  { %570 = vperm.xlu1 %1187, %v1083_v20   ;;  %v1216_v30 = vld [vmem:[#allocation5 + $0xf4] ss:$8 sps:$4 sm:$0xff]   ;;  %v1214_v33 = vld [vmem:[#allocation5 + $0xf0] ss:$8 sps:$4 sm:$0xff]   ;;  %v1217_v35 = vld [vmem:[#allocation5 + $0xe0] ss:$8 sps:$4 sm:$0xff]  }
  0x3e   :  { %v1222_v36 = vld [vmem:[#allocation5 + $0xd4] ss:$8 sps:$4 sm:$0xff]   ;;  %v1220_v37 = vld [vmem:[#allocation5 + $0xd0] ss:$8 sps:$4 sm:$0xff]   ;;  %v1225_v38 = vld [vmem:[#allocation5 + $0xc4] ss:$8 sps:$4 sm:$0xff]  }
  0x3f   :  { %192 = vmatpush1.bf16.msra.mxu0 %v1196_v6  ;;  %v1223_v39 = vld [vmem:[#allocation5 + $0xc0] ss:$8 sps:$4 sm:$0xff]   ;;  %v1228_v40 = vld [vmem:[#allocation5 + $0xb4] ss:$8 sps:$4 sm:$0xff]   ;;  %v1226_v41 = vld [vmem:[#allocation5 + $0xb0] ss:$8 sps:$4 sm:$0xff]  }
  0x40   :  { %193 = vmatprep.subr.bf16.mxu0 %v1197_v7  ;;  %293 = vperm.xlu0 %1186, %v233_v21   ;;  %v1231_v42 = vld [vmem:[#allocation5 + $0xa4] ss:$8 sps:$4 sm:$0xff]   ;;  %v1229_v43 = vld [vmem:[#allocation5 + $0xa0] ss:$8 sps:$4 sm:$0xff]   ;;  %v1234_v44 = vld [vmem:[#allocation5 + $0x94] ss:$8 sps:$4 sm:$0xff]  }
  0x41   :  { %575 = vperm.xlu1 %1187, %v1084_v22   ;;  %v1232_v45 = vld [vmem:[#allocation5 + $0x90] ss:$8 sps:$4 sm:$0xff]   ;;  %v1237_v46 = vld [vmem:[#allocation5 + $0x84] ss:$8 sps:$4 sm:$0xff]   ;;  %v1235_v47 = vld [vmem:[#allocation5 + $0x80] ss:$8 sps:$4 sm:$0xff]  }
  0x42   :  { %v1238_v48 = vld [vmem:[#allocation2 + $0x8] sm:$0xff]   ;;  %v1512_v49 = vld [vmem:[%s1585_s1] sm:$0xff]   ;;  %v1089_v57 = vld [vmem:[%s1589_s5 + $0x10] sm:$0xff] }
  0x43   :  { %194 = vmatpush1.bf16.msra.mxu0 %v1199_v8  ;;  %v1090_v61 = vld [vmem:[%s1589_s5 + $0x18] sm:$0xff]  ;;  %v1255_v21 = vld [vmem:[#allocation7 + $0x34] ss:$8 sps:$4 sm:$0xff]   ;;  %v1253_v22 = vld [vmem:[#allocation7 + $0x30] ss:$8 sps:$4 sm:$0xff]  }
  0x44   :  { %195 = vmatprep.subr.bf16.mxu0 %v1200_v9  ;;  %355 = vperm.xlu0 %1186, %v1060_v23   ;;  %v1243_v9 = vld [vmem:[#allocation7 + $0x74] ss:$8 sps:$4 sm:$0xff]   ;;  %v1252_v19 = vld [vmem:[#allocation7 + $0x44] ss:$8 sps:$4 sm:$0xff]   ;;  %v1250_v20 = vld [vmem:[#allocation7 + $0x40] ss:$8 sps:$4 sm:$0xff]  }
  0x45   :  { %360 = vperm.xlu1 %1187, %v1061_v24  }
  0x47   :  { %196 = vmatpush1.bf16.msra.mxu0 %v1202_v10 }
  0x48   :  { %197 = vmatprep.subr.bf16.mxu0 %v1203_v11 }
  0x4b   :  { %198 = vmatpush1.bf16.msra.mxu0 %v1205_v12  ;;  %v1543_v12 = vld [vmem:[%s1585_s1 + $0x10] sm:$0xff]  }
  0x4c   :  { %199 = vmatprep.subr.bf16.mxu0 %v1206_v13  ;;  %v1241_v13 = vld [vmem:[#allocation7 + $0x70] ss:$8 sps:$4 sm:$0xff]  }
  0x4f   :  { %200 = vmatpush1.bf16.msra.mxu0 %v1208_v14  ;;  %v1246_v14 = vld [vmem:[#allocation7 + $0x64] ss:$8 sps:$4 sm:$0xff]  }
  0x50   :  { %201 = vmatprep.subr.bf16.mxu0 %v1209_v15  ;;  %v1244_v15 = vld [vmem:[#allocation7 + $0x60] ss:$8 sps:$4 sm:$0xff]  }
  0x53   :  { %202 = vmatpush1.bf16.msra.mxu0 %v1211_v16  ;;  %v1249_v16 = vld [vmem:[#allocation7 + $0x54] ss:$8 sps:$4 sm:$0xff]  }
  0x54   :  { %1138 = vmatprep.subr.bf16.mxu0 %v1406_v18 }
  0x56   :  { %220 = vmatmul.mubr.bf16.vlgmr.msra.gmra.mxu0 %v1212_v17  ;;  %v1247_v17 = vld [vmem:[#allocation7 + $0x50] ss:$8 sps:$4 sm:$0xff]  }
  0x57   :  { %1140 = vmatprep.mubr.msk.bf16.mxu0 %vm1407_vm0, %v1406_v18 }
  0xb7   :  { %v1518_v50 = vpop.permute.xlu0 %288 }
  0xb8   :  { %v1520_v51 = vpop.permute.xlu1 %570 }
  0xbb   :  { %v1522_v52 = vpop.permute.xlu0 %293 }
  0xbc   :  { %v1524_v53 = vpop.permute.xlu1 %575 }
  0xbf   :  { %v1526_v54 = vpop.permute.xlu0 %355 }
  0xc0   :  { %v1532_v59 = vpop.permute.xlu1 %360 }
 0x116   :  { %v221_v25 = vpop.f32.mrf.mxu0 }
 0x118   :  { %v223_v26 = vpop.f32.mrf.mxu0 }
 0x11a   :  { %v225_v27 = vpop.f32.mrf.mxu0 }
 0x11b   :  { %v230_v28 = vpack.c.bf16 %v225_v27, %v221_v25  ;;  %v1258_v27 = vld [vmem:[#allocation7 + $0x24] ss:$8 sps:$4 sm:$0xff]  }
 0x11c   :  { %v227_v29 = vpop.f32.mrf.mxu0 }
 0x11d   :  { %v231_v31 = vpack.c.bf16 %v227_v29, %v223_v26  ;;  %1139 = vmatpush3.bf16.msra.mxu0 %v230_v28  ;;  %v1256_v28 = vld [vmem:[#allocation7 + $0x20] ss:$8 sps:$4 sm:$0xff]   ;;  %v1261_v29 = vld [vmem:[#allocation7 + $0x14] ss:$8 sps:$4 sm:$0xff]  }
 0x11e   :  { %1150 = vmatprep.subr.bf16.mxu0 %v1406_v18 }
 0x11f   :  { %1145 = vmatpush3.bf16.msra.mxu1 %v231_v31  ;;  %v1264_v31 = vld [vmem:[#allocation7 + $0x4] ss:$8 sps:$4 sm:$0xff]  }
 0x120   :  { %471 = vmatprep.subr.bf16.mxu1 %v1216_v30  ;;  %1141 = vmatmul.mubr.msk.bf16.vlgmr.msra.gmra.mxu0 %vm241_vm1, %v1512_v49  ;;  %v1259_v30 = vld [vmem:[#allocation7 + $0x10] ss:$8 sps:$4 sm:$0xff]  }
 0x121   :  { %1152 = vmatprep.mubr.msk.bf16.mxu0 %vm1407_vm0, %v1406_v18 }
 0x122   :  { %1147 = vmatmul.mubr.msk.bf16.vlgmr.msra.gmra.mxu1 %vm241_vm1, %v1500_v32 }
 0x123   :  { %472 = vmatpush1.bf16.msra.mxu1 %v1214_v33  ;;  %503 = vmatprep.mubr.bf16.mxu1 %v1405_v0  ;;  %v1262_v33 = vld [vmem:[#allocation7] ss:$8 sps:$4 sm:$0xff]  }
 0x124   :  { %473 = vmatprep.subr.bf16.mxu1 %v1219_v34 }
 0x127   :  { %474 = vmatpush1.bf16.msra.mxu1 %v1217_v35 }
 0x128   :  { %475 = vmatprep.subr.bf16.mxu1 %v1222_v36 }
 0x12b   :  { %476 = vmatpush1.bf16.msra.mxu1 %v1220_v37 }
 0x12c   :  { %477 = vmatprep.subr.bf16.mxu1 %v1225_v38 }
 0x12f   :  { %478 = vmatpush1.bf16.msra.mxu1 %v1223_v39  ;;  %v582_v39 = vld [vmem:[%s1589_s5] sm:$0xff] }
 0x130   :  { %479 = vmatprep.subr.bf16.mxu1 %v1228_v40 }
 0x133   :  { %480 = vmatpush1.bf16.msra.mxu1 %v1226_v41 }
 0x134   :  { %481 = vmatprep.subr.bf16.mxu1 %v1231_v42 }
 0x137   :  { %482 = vmatpush1.bf16.msra.mxu1 %v1229_v43  ;;  %v583_v43 = vld [vmem:[%s1589_s5 + $0x8] sm:$0xff]  ;;  %s1408_s5 = smov [#allocation10]  }
 0x138   :  { %483 = vmatprep.subr.bf16.mxu1 %v1234_v44  ;;  %s1027_s22 = sshll.u32 %s1408_s5, 4  ;;  %s1028_s22 = int_to_ptr.vmem [resolvable:$true] %s1027_s22 }
 0x139   :  { %s1369_s4 = scalar_lea.vmem %s1028_s22, 512  ;;  %p1374_p7 = scmp.lt.s32.totalorder %s1028_s22, %s1028_s22 }
 0x13a   :  { %p1370_p6 = scmp.ne.s32.totalorder %s1028_s22, %s1369_s4  ;;  %p1375_p8 = scmp.lt.s32.totalorder %s1369_s4, %s1369_s4 }
 0x13b   :  { %484 = vmatpush1.bf16.msra.mxu1 %v1232_v45 }
 0x13c   :  { %485 = vmatprep.subr.bf16.mxu1 %v1237_v46  ;;  %p1376_p9 = por %p1375_p8, %p1374_p7 }
 0x13e   :  { %p1377_p10 = pnand %p1376_p9, %p1370_p6 }
 0x13f   :  { %486 = vmatpush1.bf16.msra.mxu1 %v1235_v47 }
 0x140   :  { %1156 = vmatprep.subr.bf16.mxu1 %v1406_v18 }
 0x142   :  { %504 = vmatmul.mubr.bf16.vlgmr.msra.gmra.mxu1 %v1238_v48 }
 0x143   :  { %1158 = vmatprep.mubr.msk.bf16.mxu1 %vm1407_vm0, %v1406_v18 }
 0x1e0   :  { %v279_v23 = vpop.f32.mrf.mxu0 }
 0x1e1   :  { %v296_v35 = vmul.f32 %v1518_v50, %v279_v23 }
 0x1e2   :  { %v346_v55 = vpop.f32.mrf.mxu1  ;;  %v1142_v24 = vpop.f32.mrf.mxu0 }
 0x1e3   :  { %v363_v56 = vmul.f32 %v1526_v54, %v346_v55 }
 0x1e4   :  { %v1148_v58 = vpop.f32.mrf.mxu1  ;;  %v282_v25 = vpop.f32.mrf.mxu0 }
 0x1e5   :  { %v589_v62 = vadd.f32 %v1089_v57, %v363_v56  ;;  %v297_v41 = vmul.f32 %v1522_v52, %v282_v25 }
 0x1e6   :  { %v349_v60 = vpop.f32.mrf.mxu1  ;;  %v1143_v26 = vpop.f32.mrf.mxu0 }
 0x1e7   :  { %v364_v63 = vmul.f32 %v1532_v59, %v349_v60  ;;  %v594_v3 = vmax.f32 %v589_v62, 0.0  ;;  %v1014_v26 = vld [vmem:[#allocation8 + $0x18] sm:$0xff] }
 0x1e8   :  { %v1149_v1 = vpop.f32.mrf.mxu1 }
 0x1e9   :  { %v590_v2 = vadd.f32 %v1090_v61, %v364_v63  ;;  %v1267_v63 = vld [vmem:[#allocation7 + $0xf4] ss:$8 sps:$4 sm:$0xff]  }
 0x1eb   :  { %v595_v4 = vmax.f32 %v590_v2, 0.0  ;;  %v1265_v2 = vld [vmem:[#allocation7 + $0xf0] ss:$8 sps:$4 sm:$0xff]  }
 0x1ed   :  { %v1538_v5 = vpack.c.bf16 %v595_v4, %v594_v3  ;;  %v1270_v3 = vld [vmem:[#allocation7 + $0xe4] ss:$8 sps:$4 sm:$0xff]   ;;  %v1268_v4 = vld [vmem:[#allocation7 + $0xe0] ss:$8 sps:$4 sm:$0xff]  }
 0x202   :  { %v505_v6 = vpop.f32.mrf.mxu1 }
 0x204   :  { %v507_v7 = vpop.f32.mrf.mxu1 }
 0x205   :  { %v1271_v7 = vld [vmem:[#allocation7 + $0xd0] ss:$8 sps:$4 sm:$0xff]  }
 0x206   :  { %v508_v8 = vpop.f32.mrf.mxu1 }
 0x207   :  { %v512_v10 = vpack.c.bf16 %v508_v8, %v505_v6  ;;  %v1273_v6 = vld [vmem:[#allocation7 + $0xd4] ss:$8 sps:$4 sm:$0xff]   ;;  %v1274_v8 = vld [vmem:[#allocation7 + $0xc0] ss:$8 sps:$4 sm:$0xff]  }
 0x208   :  { %v510_v11 = vpop.f32.mrf.mxu1 }
 0x209   :  { %1151 = vmatpush3.bf16.msra.mxu0 %v512_v10  ;;  %v1282_v10 = vld [vmem:[#allocation7 + $0xa4] ss:$8 sps:$4 sm:$0xff]   ;;  %v1285_v11 = vld [vmem:[#allocation7 + $0x94] ss:$8 sps:$4 sm:$0xff]  }
 0x20a   :  { %693 = vmatprep.subr.bf16.mxu0 %v1243_v9  ;;  %v1277_v9 = vld [vmem:[#allocation7 + $0xb0] ss:$8 sps:$4 sm:$0xff]  }
 0x20c   :  { %1153 = vmatmul.mubr.msk.bf16.vlgmr.msra.gmra.mxu0 %vm241_vm1, %v1543_v12 }
 0x20d   :  { %694 = vmatpush1.bf16.msra.mxu0 %v1241_v13  ;;  %725 = vmatprep.mubr.bf16.mxu0 %v1405_v0  ;;  %v1288_v13 = vld [vmem:[#allocation7 + $0x84] ss:$8 sps:$4 sm:$0xff]  }
 0x20e   :  { %695 = vmatprep.subr.bf16.mxu0 %v1246_v14  ;;  %v1286_v14 = vld [vmem:[#allocation7 + $0x80] ss:$8 sps:$4 sm:$0xff]  }
 0x211   :  { %696 = vmatpush1.bf16.msra.mxu0 %v1244_v15 }
 0x212   :  { %697 = vmatprep.subr.bf16.mxu0 %v1249_v16 }
 0x215   :  { %698 = vmatpush1.bf16.msra.mxu0 %v1247_v17 }
 0x216   :  { %699 = vmatprep.subr.bf16.mxu0 %v1252_v19 }
 0x219   :  { %700 = vmatpush1.bf16.msra.mxu0 %v1250_v20 }
 0x21a   :  { %701 = vmatprep.subr.bf16.mxu0 %v1255_v21  ;;  %v1013_v21 = vld [vmem:[#allocation8 + $0x10] sm:$0xff] }
 0x21d   :  { %702 = vmatpush1.bf16.msra.mxu0 %v1253_v22 }
 0x21e   :  { %703 = vmatprep.subr.bf16.mxu0 %v1258_v27 }
 0x221   :  { %704 = vmatpush1.bf16.msra.mxu0 %v1256_v28 }
 0x222   :  { %705 = vmatprep.subr.bf16.mxu0 %v1261_v29 }
 0x225   :  { %706 = vmatpush1.bf16.msra.mxu0 %v1259_v30 }
 0x226   :  { %707 = vmatprep.subr.bf16.mxu0 %v1264_v31 }
 0x229   :  { %708 = vmatpush1.bf16.msra.mxu0 %v1262_v33 }
 0x22a   :  { %1168 = vmatprep.subr.bf16.mxu0 %v1406_v18 }
 0x2cc   :  { %v561_v34 = vpop.f32.mrf.mxu0 }
 0x2cd   :  { %v578_v36 = vmul.f32 %v1520_v51, %v561_v34 }
 0x2ce   :  { %v1154_v37 = vpop.f32.mrf.mxu0 }
 0x2cf   :  { %v580_v38 = vadd.f32 %v578_v36, %v296_v35  ;;  %v1008_v37 = vld [vmem:[#allocation8] sm:$0xff] }
 0x2d0   :  { %v564_v40 = vpop.f32.mrf.mxu0 }
 0x2d1   :  { %v579_v42 = vmul.f32 %v1524_v53, %v564_v40  ;;  %v584_v45 = vadd.f32 %v582_v39, %v580_v38 }
 0x2d2   :  { %v1155_v44 = vpop.f32.mrf.mxu0 }
 0x2d3   :  { %v581_v46 = vadd.f32 %v579_v42, %v297_v41  ;;  %v591_v48 = vmax.f32 %v584_v45, 0.0 }
 0x2d5   :  { %v585_v47 = vadd.f32 %v583_v43, %v581_v46  ;;  %v1009_v43 = vld [vmem:[#allocation8 + $0x8] sm:$0xff] }
 0x2d7   :  { %v592_v55 = vmax.f32 %v585_v47, 0.0 }
 0x2d9   :  { %v593_v56 = vpack.c.bf16 %v592_v55, %v591_v48 }
 0x2db   :  { %726 = vmatmul.mubr.bf16.vlgmr.msra.gmra.mxu0 %v593_v56 }
 0x2dc   :  { %1170 = vmatprep.mubr.msk.bf16.mxu0 %vm1407_vm0, %v1406_v18 }
 0x39b   :  { %v727_v57 = vpop.f32.mrf.mxu0 }
 0x39d   :  { %v729_v58 = vpop.f32.mrf.mxu0 }
 0x39f   :  { %v731_v60 = vpop.f32.mrf.mxu0 }
 0x3a0   :  { %v736_v61 = vpack.c.bf16 %v731_v60, %v727_v57 }
 0x3a1   :  { %v733_v62 = vpop.f32.mrf.mxu0 }
 0x3a2   :  { %1157 = vmatpush3.bf16.msra.mxu1 %v736_v61  ;;  %v737_v1 = vpack.c.bf16 %v733_v62, %v729_v58 }
 0x3a3   :  { %1162 = vmatprep.subr.bf16.mxu1 %v1406_v18 }
 0x3a5   :  { %1159 = vmatmul.mubr.msk.bf16.vlgmr.msra.gmra.mxu1 %vm241_vm1, %v1512_v49  ;;  %v1276_v49 = vld [vmem:[#allocation7 + $0xc4] ss:$8 sps:$4 sm:$0xff]  }
 0x3a6   :  { %1163 = vmatpush3.bf16.msra.mxu1 %v737_v1  ;;  %1164 = vmatprep.mubr.msk.bf16.mxu1 %vm1407_vm0, %v1406_v18  ;;  %v1279_v18 = vld [vmem:[#allocation7 + $0xb4] ss:$8 sps:$4 sm:$0xff]  }
 0x3a7   :  { %921 = vmatprep.subr.bf16.mxu1 %v1267_v63 }
 0x3ad   :  { %1165 = vmatmul.mubr.msk.bf16.vlgmr.msra.gmra.mxu1 %vm241_vm1, %v1500_v32  ;;  %v1280_v32 = vld [vmem:[#allocation7 + $0xa0] ss:$8 sps:$4 sm:$0xff]  }
 0x3ae   :  { %922 = vmatpush1.bf16.msra.mxu1 %v1265_v2  ;;  %953 = vmatprep.mubr.bf16.mxu1 %v1405_v0  ;;  %v1283_v0 = vld [vmem:[#allocation7 + $0x90] ss:$8 sps:$4 sm:$0xff]  }
 0x3af   :  { %923 = vmatprep.subr.bf16.mxu1 %v1270_v3 }
 0x3b2   :  { %924 = vmatpush1.bf16.msra.mxu1 %v1268_v4 }
 0x3b3   :  { %925 = vmatprep.subr.bf16.mxu1 %v1273_v6 }
 0x3b6   :  { %926 = vmatpush1.bf16.msra.mxu1 %v1271_v7 }
 0x3b7   :  { %927 = vmatprep.subr.bf16.mxu1 %v1276_v49 }
 0x3ba   :  { %928 = vmatpush1.bf16.msra.mxu1 %v1274_v8 }
 0x3bb   :  { %929 = vmatprep.subr.bf16.mxu1 %v1279_v18 }
 0x3be   :  { %930 = vmatpush1.bf16.msra.mxu1 %v1277_v9 }
 0x3bf   :  { %931 = vmatprep.subr.bf16.mxu1 %v1282_v10 }
 0x3c2   :  { %932 = vmatpush1.bf16.msra.mxu1 %v1280_v32 }
 0x3c3   :  { %933 = vmatprep.subr.bf16.mxu1 %v1285_v11 }
 0x3c6   :  { %934 = vmatpush1.bf16.msra.mxu1 %v1283_v0 }
 0x3c7   :  { %935 = vmatprep.subr.bf16.mxu1 %v1288_v13 }
 0x3ca   :  { %936 = vmatpush1.bf16.msra.mxu1 %v1286_v14 }
 0x3cd   :  { %954 = vmatmul.mubr.bf16.vlgmr.msra.gmra.mxu1 %v1538_v5 }
 0x465   :  { %v772_v15 = vpop.f32.mrf.mxu1 }
 0x466   :  { %v779_v35 = vmul.f32 %v772_v15, %v1518_v50 }
 0x467   :  { %v1160_v16 = vpop.f32.mrf.mxu1 }
 0x469   :  { %v775_v17 = vpop.f32.mrf.mxu1 }
 0x46a   :  { %v780_v40 = vmul.f32 %v775_v17, %v1522_v52 }
 0x46b   :  { %v1161_v19 = vpop.f32.mrf.mxu1 }
 0x46d   :  { %v815_v20 = vpop.f32.mrf.mxu1 }
 0x46e   :  { %v822_v22 = vmul.f32 %v815_v20, %v1526_v54 }
 0x46f   :  { %v1166_v23 = vpop.f32.mrf.mxu1 }
 0x470   :  { %v1015_v24 = vadd.f32 %v1013_v21, %v822_v22 }
 0x471   :  { %v818_v25 = vpop.f32.mrf.mxu1 }
 0x472   :  { %1020 = vst [vmem:[#allocation10 + $0x10] sm:$0xff] %v1015_v24  ;;  %v823_v27 = vmul.f32 %v818_v25, %v1532_v59 }
 0x473   :  { %v1167_v28 = vpop.f32.mrf.mxu1 }
 0x474   :  { %v1016_v29 = vadd.f32 %v1014_v26, %v823_v27 }
 0x476   :  { %1021 = vst [vmem:[#allocation10 + $0x18] sm:$0xff] %v1016_v29 }
 0x48d   :  { %v955_v30 = vpop.f32.mrf.mxu1 }
 0x48f   :  { %v957_v5 = vpop.f32.mrf.mxu1 }
 0x491   :  { %v958_v31 = vpop.f32.mrf.mxu1 }
 0x492   :  { %v962_v33 = vpack.c.bf16 %v958_v31, %v955_v30 }
 0x493   :  { %v960_v34 = vpop.f32.mrf.mxu1 }
 0x494   :  { %1169 = vmatpush3.bf16.msra.mxu0 %v962_v33 }
 0x497   :  { %1171 = vmatmul.mubr.msk.bf16.vlgmr.msra.gmra.mxu0 %vm241_vm1, %v1543_v12 }
 0x557   :  { %v997_v54 = vpop.f32.mrf.mxu0 }
 0x558   :  { %v1004_v36 = vmul.f32 %v997_v54, %v1520_v51 }
 0x559   :  { %v1172_v38 = vpop.f32.mrf.mxu0 }
 0x55a   :  { %v1006_v59 = vadd.f32 %v1004_v36, %v779_v35 }
 0x55b   :  { %v1000_v39 = vpop.f32.mrf.mxu0 }
 0x55c   :  { %v1010_v41 = vadd.f32 %v1008_v37, %v1006_v59  ;;  %v1005_v42 = vmul.f32 %v1000_v39, %v1524_v53 }
 0x55d   :  { %v1173_v44 = vpop.f32.mrf.mxu0 }
 0x55e   :  { %1017 = vst [vmem:[#allocation10] sm:$0xff] %v1010_v41  ;;  %v1007_v12 = vadd.f32 %v1005_v42, %v780_v40 }
 0x560   :  { %v1011_v45 = vadd.f32 %v1009_v43, %v1007_v12 }
 0x562   :  { %1018 = vst [vmem:[#allocation10 + $0x8] sm:$0xff] %v1011_v45 }
 0x563   :  { %1380 = shalt.err (!%p1377_p10)
}
 0x564   :  { %1033 = dma.vmem_to_hbm [thread:$0]  %s1028_s22, 512, %s1591_s7, [#allocation4], %s1398_s27, %s1398_s27, %s1399_s28  }
 0x565   :  { %1395 = dma.done.wait [#allocation4], 512  }
 0x566   :  { %1396 = vsyncadd [#allocation4], 4294966784 }
 0x567   :  { %1037 = vsyncpa [#allocation3], 1 }
 0x568   :  { %1038 = vsyncpa [#allocation6], 1 }
 0x569   :  { %1039 = vsyncpa [#allocation9], 1 }
 0x56a   :  { %1040 = vsyncpa [#allocation4], 1 }

</bundles_post_ra>
